<compile_context>
chip_gen: v5e
topology: v5e:2x2
jax: 0.10.0
libtpu: 0.0.40
codegen_flags: <defaults>
</compile_context>

<pallas_src>
import functools

import jax
import jax.numpy as jnp
from jax import lax
from jax.experimental import pallas as pl
from jax.experimental.pallas import tpu as pltpu

_MiB = 1024 * 1024
_LANE = 128


def _cdiv(a, b):
    return -(-a // b)


@functools.lru_cache(maxsize=None)
def _tpu_params():
    """Return (vmem_capacity_bytes, num_tensorcores) with safe fallbacks."""
    vmem_cap = 128 * _MiB
    ncores = 1
    try:
        info = pltpu.get_tpu_info()
        vmem_cap = int(getattr(info, "vmem_capacity_bytes", vmem_cap))
    except Exception:
        pass
    try:
        kind = jax.devices()[0].device_kind.lower()
        # 2 TensorCores per chip: v7x / v5p / v4 (megacore). 1 TC: v5e / v6e.
        if ("v7" in kind) or ("v5p" in kind) or ("v4" in kind and "lite" not in kind):
            ncores = 2
    except Exception:
        pass
    return vmem_cap, ncores


def _l1_partial_kernel(x_ref, y_ref, o_ref, *, nb, nb_half, block_rows, width,
                       rem, ncores, strip_rows, acc_rows):
    c = pl.program_id(0)          # "parallel" (core) axis
    i = pl.program_id(1)          # sequential reduction axis
    g = (c * nb_half + i) if ncores > 1 else i   # global row-block index

    @pl.when(i == 0)
    def _():
        o_ref[...] = jnp.zeros_like(o_ref)

    def fold(n_strips, masked):
        # Strip-wise fold: the full f32 diff block is never materialized in VMEM.
        def body(j, acc):
            r = pl.multiple_of(j * strip_rows, strip_rows)
            x = x_ref[pl.ds(r, strip_rows), :].astype(jnp.float32)
            y = y_ref[pl.ds(r, strip_rows), :].astype(jnp.float32)
            d = jnp.abs(x - y)
            if masked:
                row_ids = r + lax.broadcasted_iota(jnp.int32, (strip_rows, 1), 0)
                d = jnp.where(row_ids < rem, d, 0.0)
            if strip_rows != 8:
                d = d.reshape(strip_rows // 8, 8, width).sum(axis=0)
            return acc + d

        acc0 = jnp.zeros((8, width), jnp.float32)
        acc = lax.fori_loop(0, n_strips, body, acc0, unroll=min(8, n_strips))
        o_ref[...] += acc

    def fold_whole_block():
        # Tiny-input fallback (rows not a multiple of 8 => single block, no tail).
        d = jnp.abs(x_ref[...].astype(jnp.float32) - y_ref[...].astype(jnp.float32))
        o_ref[...] += d.sum(axis=0, keepdims=True)

    if acc_rows == 1:
        if ncores > 1:
            pl.when(g < nb)(fold_whole_block)
        else:
            fold_whole_block()
        return

    full = lambda: fold(block_rows // strip_rows, masked=False)
    last = lambda: fold(_cdiv(rem, strip_rows), masked=True)

    if rem == block_rows:
        # No partial last block: single unmasked fast path.
        if ncores > 1:
            pl.when(g < nb)(full)   # skip the (at most one) overhanging block
        else:
            full()
    else:
        # Masking only ever runs for the last block (pl.when-gated).
        pl.when(g < nb - 1)(full)
        pl.when(g == nb - 1)(last)


@jax.jit
def reconstruction_loss(inp, tgt):
    """Pallas equivalent of nn.L1Loss(reduction='mean')(input, target)."""
    assert inp.shape == tgt.shape
    total = inp.size
    dtype = inp.dtype
    itemsize = jnp.dtype(dtype).itemsize
    pack = max(1, 4 // itemsize)          # sublane packing: f32->1, bf16->2, i8->4
    row_align = 8 * pack                  # native packed tile rows

    vmem_cap, ncores = _tpu_params()
    # ~8 MiB per input per pipeline buffer, capped so 2 inputs x 2 buffers stay
    # well under the chip's VMEM (v7x: 32 MiB of buffers on 64 MiB VMEM).
    pipeline_budget = min(vmem_cap // 2, 48 * _MiB)
    block_bytes = min(8 * _MiB, pipeline_budget // 4)
    vmem_limit = max(32 * _MiB, min(vmem_cap - 16 * _MiB, 64 * _MiB))

    # ---- lane-dense 2D view (free reshape; no padding, no casting) ----
    width = None
    for w in (1024, 512, 256, 128):
        if total % w == 0 and (total // w) % row_align == 0:
            width = w
            break
    if width is None:
        for w in (1024, 512, 256, 128):
            if total % w == 0:
                width = w
                break

    if width is None:
        # TODO(synk): element counts not divisible by 128 fall back to a
        # zero-padded copy (padding contributes |0-0| = 0 to the sum).
        width = _LANE
        padded = _cdiv(total, row_align * width) * (row_align * width)
        pad = padded - total
        x2d = jnp.pad(inp.reshape(-1), (0, pad)).reshape(-1, width)
        y2d = jnp.pad(tgt.reshape(-1), (0, pad)).reshape(-1, width)
    else:
        x2d = inp.reshape(total // width, width)
        y2d = tgt.reshape(total // width, width)

    rows = x2d.shape[0]

    # ---- block rows: ~block_bytes per input per buffer, packed-tile aligned ----
    br = max(row_align, (block_bytes // (width * itemsize)) // row_align * row_align)
    block_rows = rows if rows <= br else br
    nb = _cdiv(rows, block_rows)          # number of row blocks
    nb_half = _cdiv(nb, ncores)           # row blocks per core
    rem = rows - (nb - 1) * block_rows    # valid rows in the last block (static)

    if block_rows % 8 == 0:
        acc_rows = 8
        strip_rows = row_align if block_rows % row_align == 0 else 8
    else:                                 # only possible when block_rows == rows (nb == 1)
        acc_rows = 1
        strip_rows = 8                    # unused on this path

    if ncores > 1:
        # Clamp so the (at most one) overhanging block on the second core
        # re-reads an in-bounds block; its contribution is skipped in-kernel.
        def in_map(c, i):
            return (jnp.minimum(c * nb_half + i, nb - 1), 0)
    else:
        def in_map(c, i):
            return (i, 0)

    kernel = functools.partial(
        _l1_partial_kernel, nb=nb, nb_half=nb_half, block_rows=block_rows,
        width=width, rem=rem, ncores=ncores, strip_rows=strip_rows,
        acc_rows=acc_rows)

    partials = pl.pallas_call(
        kernel,
        out_shape=jax.ShapeDtypeStruct((ncores, acc_rows, width), jnp.float32),
        grid_spec=pltpu.PrefetchScalarGridSpec(
            num_scalar_prefetch=0,
            grid=(ncores, nb_half),
            in_specs=[
                pl.BlockSpec((block_rows, width), in_map),
                pl.BlockSpec((block_rows, width), in_map),
            ],
            # Output block is constant along the reduction axis -> VMEM-resident
            # accumulator (standard P3 pattern, no scratch needed).
            out_specs=pl.BlockSpec((None, acc_rows, width), lambda c, i: (c, 0, 0)),
        ),
        compiler_params=pltpu.CompilerParams(
            # TODO(synk): if a v7x profile shows the leading axis not sharding
            # across the 2 TCs, switch it to pltpu.CORE_PARALLEL.
            dimension_semantics=("parallel", "arbitrary"),
            vmem_limit_bytes=int(vmem_limit),
        ),
        cost_estimate=pl.CostEstimate(
            flops=3 * total,
            transcendentals=0,
            bytes_accessed=2 * total * itemsize + ncores * acc_rows * width * 4,
        ),
    )(x2d, y2d)

    # Final small cross-lane reduce + mean, done once outside the hot loop.
    loss = jnp.sum(partials) / jnp.float32(total)
    return loss.astype(dtype)


if __name__ == "__main__":
    key = jax.random.PRNGKey(0)
    k1, k2 = jax.random.split(key)
    shape = (2, 4, 16, 16)  # N, C, H, W
    inp = jax.random.normal(k1, shape, dtype=jnp.float32)
    tgt = jax.random.normal(k2, shape, dtype=jnp.float32)

    loss = reconstruction_loss(inp, tgt)
    jax.block_until_ready(loss)

    ref = jnp.mean(jnp.abs(inp - tgt))
    assert jnp.allclose(loss, ref, rtol=1e-5, atol=1e-6), (loss, ref)
    print("KERNEL_OK")
</pallas_src>

<mosaic_0001>
module attributes {stable_mosaic.version = 11 : i64} {
  func.func @_l1_partial_kernel(%arg0: i32, %arg1: i32, %arg2: memref<8x256xf32, #tpu.memory_space<vmem>>, %arg3: memref<8x256xf32, #tpu.memory_space<vmem>>, %arg4: memref<1x8x256xf32, #tpu.memory_space<vmem>>) attributes {dimension_semantics = [#tpu.dimension_semantics<parallel>, #tpu.dimension_semantics<arbitrary>], iteration_bounds = array<i64: 1, 1>, scalar_prefetch = 0 : i64, scratch_operands = 0 : i64, tpu.core_type = #tpu.core_type<tc>, window_params = [{transform_indices = @transform_0, window_bounds = array<i64: 8, 256>}, {transform_indices = @transform_1, window_bounds = array<i64: 8, 256>}, {transform_indices = @transform_2, window_bounds = array<i64: 1, 8, 256>}]} {
    %c0_i32 = arith.constant 0 : i32
    %0 = arith.cmpi eq, %arg1, %c0_i32 : i32
    %1 = arith.extui %0 : i1 to i32
    %c0_i32_0 = arith.constant 0 : i32
    %2 = arith.cmpi ne, %1, %c0_i32_0 : i32
    scf.if %2 {
      %cst_9 = arith.constant 0.000000e+00 : f32
      %19 = vector.broadcast %cst_9 : f32 to vector<8x256xf32>
      %c0_10 = arith.constant 0 : index
      %c0_11 = arith.constant 0 : index
      %c0_12 = arith.constant 0 : index
      %20 = vector.load %arg4[%c0_10, %c0_11, %c0_12] : memref<1x8x256xf32, #tpu.memory_space<vmem>>, vector<1x8x256xf32>
      %21 = vector.shape_cast %20 : vector<1x8x256xf32> to vector<8x256xf32>
      %22 = vector.shape_cast %19 : vector<8x256xf32> to vector<1x8x256xf32>
      tpu.vector_store %arg4[%c0_10, %c0_11, %c0_12], %22 {strides = array<i32>} : memref<1x8x256xf32, #tpu.memory_space<vmem>>, vector<1x8x256xf32>,
    } else {
    }
    %cst = arith.constant 0.000000e+00 : f32
    %3 = vector.broadcast %cst : f32 to vector<8x256xf32>
    %c0_i32_1 = arith.constant 0 : i32
    %c8_i32 = arith.constant 8 : i32
    %4 = arith.muli %c0_i32_1, %c8_i32 : i32
    %5 = tpu.assume_multiple %4, 8 : i32
    %6 = arith.index_cast %5 : i32 to index
    %c0 = arith.constant 0 : index
    %7 = vector.load %arg2[%6, %c0] : memref<8x256xf32, #tpu.memory_space<vmem>>, vector<8x256xf32>
    %8 = arith.index_cast %5 : i32 to index
    %c0_2 = arith.constant 0 : index
    %9 = vector.load %arg3[%8, %c0_2] : memref<8x256xf32, #tpu.memory_space<vmem>>, vector<8x256xf32>
    %10 = arith.subf %7, %9 : vector<8x256xf32>
    %11 = math.absf %10 : vector<8x256xf32>
    %12 = arith.addf %3, %11 : vector<8x256xf32>
    %c1_i32 = arith.constant 1 : i32
    %c0_3 = arith.constant 0 : index
    %c0_4 = arith.constant 0 : index
    %c0_5 = arith.constant 0 : index
    %13 = vector.load %arg4[%c0_3, %c0_4, %c0_5] : memref<1x8x256xf32, #tpu.memory_space<vmem>>, vector<1x8x256xf32>
    %14 = vector.shape_cast %13 : vector<1x8x256xf32> to vector<8x256xf32>
    %15 = arith.addf %14, %12 : vector<8x256xf32>
    %c0_6 = arith.constant 0 : index
    %c0_7 = arith.constant 0 : index
    %c0_8 = arith.constant 0 : index
    %16 = vector.load %arg4[%c0_6, %c0_7, %c0_8] : memref<1x8x256xf32, #tpu.memory_space<vmem>>, vector<1x8x256xf32>
    %17 = vector.shape_cast %16 : vector<1x8x256xf32> to vector<8x256xf32>
    %18 = vector.shape_cast %15 : vector<8x256xf32> to vector<1x8x256xf32>
    tpu.vector_store %arg4[%c0_6, %c0_7, %c0_8], %18 {strides = array<i32>} : memref<1x8x256xf32, #tpu.memory_space<vmem>>, vector<1x8x256xf32>,
    return
  }
  func.func @transform_0(%arg0: i32, %arg1: i32) -> (i32, i32) {
    %c0_i32 = arith.constant 0 : i32
    %c0_i32_0 = arith.constant 0 : i32
    return %arg1, %c0_i32 : i32, i32
  }
  func.func @transform_1(%arg0: i32, %arg1: i32) -> (i32, i32) {
    %c0_i32 = arith.constant 0 : i32
    %c0_i32_0 = arith.constant 0 : i32
    return %arg1, %c0_i32 : i32, i32
  }
  func.func @transform_2(%arg0: i32, %arg1: i32) -> (i32, i32, i32) {
    %c0_i32 = arith.constant 0 : i32
    %c0_i32_0 = arith.constant 0 : i32
    %c0_i32_1 = arith.constant 0 : i32
    return %arg0, %c0_i32, %c0_i32_0 : i32, i32, i32
  }
}

</mosaic_0001>

<bundles_post_ra>
// kernel: reconstruction_loss.1
= control target key start
LH: loop header
LB: loop body
LE: loop exit
PB: predicated region body
PF: predicated region fallthrough
CT: control target
= control target key end

     0   :  { %s76_s0 = inlined_call_operand.vmem [shape: f32[8,256], index: 0, kind: input, shape index: {}]   ;;  %s77_s1 = inlined_call_operand.vmem [shape: f32[8,256], index: 1, kind: input, shape index: {}]   ;;  %s78_s2 = inlined_call_operand.vmem [shape: f32[1,8,256], index: 2, kind: output, shape index: {}]  }
   0x1   :  { %v20_v0 = vld [vmem:[%s76_s0] sm:$0xff]  ;;  %v21_v2 = vld [vmem:[%s76_s0 + $0x8] sm:$0xff] }
   0x2   :  { %v24_v1 = vld [vmem:[%s77_s1] sm:$0xff]  ;;  %v25_v4 = vld [vmem:[%s77_s1 + $0x8] sm:$0xff] }
   0x3   :  { %v26_v3 = vsub.f32 %v20_v0, %v24_v1  ;;  %v27_v5 = vsub.f32 %v21_v2, %v25_v4 }
   0x5   :  { %v28_v6 = vand.u32 2147483647, %v26_v3  ;;  %v29_v7 = vand.u32 2147483647, %v27_v5 }
   0x7   :  { %36 = vst [vmem:[%s78_s2] sm:$0xff] %v28_v6 }
   0x8   :  { %37 = vst [vmem:[%s78_s2 + $0x8] sm:$0xff] %v29_v7 }

</bundles_post_ra>
